<compile_context>
chip_gen: v7x
topology: tpu7x:2x2x1
jax: 0.10.0
libtpu: 0.0.40
codegen_flags: <defaults>
</compile_context>

<pallas_src>
import functools

import jax
import jax.numpy as jnp
from jax.experimental import pallas as pl
from jax.experimental.pallas import tpu as pltpu


_DEFAULT_VMEM_BYTES = 64 * 1024 * 1024  # conservative: v7x per-TC VMEM


def _vmem_capacity_bytes():
    """Per-TensorCore VMEM capacity (v5e/v6e: 128 MiB, v7x: 64 MiB)."""
    try:
        cap = int(pltpu.get_tpu_info().vmem_capacity_bytes)
        if cap > 0:
            return cap
    except Exception:
        pass
    return _DEFAULT_VMEM_BYTES


def _resident_table_limit_bytes(vmem_cap):
    # Single-buffered table (pl.Buffered(1)) + double-buffered output tiles
    # + compiler scratch must fit per-TC VMEM.
    #   v7x  (64 MiB):  ~40 MiB
    #   v5e/v6e (128 MiB): ~96 MiB
    return max(8 * 2**20, min(3 * vmem_cap // 4, vmem_cap - 24 * 2**20))


def _rows_per_step(num_queries, itemsize, cap_rows):
    """Sublane-aligned rows per grid step (8 for f32, 16 for bf16, ...)."""
    sub = max(8, 32 // max(1, itemsize))
    bq = sub
    # Amortize the ~0.35us per-grid-step pipeline overhead for larger query
    # batches.  Resident path caps at 128 rows (per-row DMA-descriptor cost
    # dominates beyond that and the unrolled body grows); the HBM fallback
    # caps lower so the number of in-flight single-row HBM copies (2*bq with
    # the cross-step double buffer) stays bounded.
    while bq < cap_rows and bq * 2 <= num_queries:
        bq *= 2
    return bq


def _resident_gather_kernel(idx_ref, table_ref, out_ref, sem, *, bq):
    """Gather `bq` rows/step from a VMEM-resident table via local DMAs.

    The DMA engine writes straight into the pipelined output tile: no
    serialized single-sublane dynamic slices, no masked per-row stores.
    """
    base = pl.program_id(0) * bq
    # Hoist all SMEM index reads before any .wait().
    rows = [idx_ref[base + q] for q in range(bq)]
    for q in range(bq):
        pltpu.make_async_copy(
            table_ref.at[pl.ds(rows[q], 1), :],
            out_ref.at[pl.ds(q, 1), :],
            sem.at[q],
        ).start()
    for q in range(bq):
        pltpu.make_async_copy(
            table_ref.at[pl.ds(rows[q], 1), :],
            out_ref.at[pl.ds(q, 1), :],
            sem.at[q],
        ).wait()


def _dma_gather_kernel(idx_ref, table_hbm, out_ref, row_buf, sem, *, bq):
    """Gather `bq` rows/step from HBM with cross-step double-buffered DMAs."""
    i = pl.program_id(0)
    n = pl.num_programs(0)
    cur = i % 2
    nxt = 1 - cur

    def issue(step, slot):
        base = step * bq
        for q in range(bq):
            row = idx_ref[base + q]
            pltpu.make_async_copy(
                table_hbm.at[pl.ds(row, 1), :],
                row_buf.at[slot, pl.ds(q, 1), :],
                sem.at[slot, q],
            ).start()

    # Prologue: prime the current slot on the first step.
    @pl.when(i == 0)
    def _():
        issue(0, 0)

    # Prefetch the next step's rows into the other slot (hides HBM latency).
    @pl.when(i + 1 < n)
    def _():
        issue(i + 1, nxt)

    # Hoist current-step SMEM index reads before the waits (waits break
    # SMEM sst->sld forwarding), and rebuild wait descriptors with the real
    # source slices used at issue time.
    base = i * bq
    rows = [idx_ref[base + q] for q in range(bq)]
    for q in range(bq):
        pltpu.make_async_copy(
            table_hbm.at[pl.ds(rows[q], 1), :],
            row_buf.at[cur, pl.ds(q, 1), :],
            sem.at[cur, q],
        ).wait()
    # Single dense, sublane/lane-aligned store into the pipelined output tile.
    out_ref[...] = row_buf[cur]


def embedding_lookup(table, indices, *, force_dma=False):
    """Gather `table[indices]` with a Pallas TPU kernel.

    table:   [num_rows, embed_dim]
    indices: [num_queries] integer
    returns: [num_queries, embed_dim] in table.dtype
    """
    num_queries = int(indices.shape[0])
    num_rows, embed_dim = table.shape
    itemsize = jnp.dtype(table.dtype).itemsize

    vmem_cap = _vmem_capacity_bytes()
    table_bytes = num_rows * embed_dim * itemsize
    use_resident = (not force_dma) and (
        table_bytes <= _resident_table_limit_bytes(vmem_cap))

    bq = _rows_per_step(num_queries, itemsize, 128 if use_resident else 32)
    padded = pl.cdiv(num_queries, bq) * bq

    # Clamp (guards against OOB HBM DMAs from bad indices; note this silently
    # remaps invalid indices instead of erroring like torch.nn.Embedding) and
    # pad so every grid step writes a full (bq, embed_dim) tile.
    idx = jnp.clip(indices.astype(jnp.int32), 0, num_rows - 1)
    if padded != num_queries:
        idx = jnp.pad(idx, (0, padded - num_queries))

    grid = (padded // bq,)
    out_shape = jax.ShapeDtypeStruct((padded, embed_dim), table.dtype)
    tile_bytes = bq * embed_dim * itemsize

    if use_resident:
        # Whole table resident in VMEM.  Constant block index => fetched once;
        # Buffered(1) so it is not pointlessly double-buffered.
        table_spec = pl.BlockSpec(
            (num_rows, embed_dim),
            lambda i, idx_ref: (0, 0),
            pipeline_mode=pl.Buffered(1),
        )
        vmem_limit = int(
            min(vmem_cap - 12 * 2**20,
                max(32 * 2**20, table_bytes + 4 * tile_bytes + 2 * 2**20)))
        grid_spec = pltpu.PrefetchScalarGridSpec(
            num_scalar_prefetch=1,
            grid=grid,
            in_specs=[table_spec],
            out_specs=pl.BlockSpec((bq, embed_dim), lambda i, idx_ref: (i, 0)),
            scratch_shapes=[pltpu.SemaphoreType.DMA((bq,))],
        )
        out = pl.pallas_call(
            functools.partial(_resident_gather_kernel, bq=bq),
            grid_spec=grid_spec,
            out_shape=out_shape,
            compiler_params=pltpu.CompilerParams(
                dimension_semantics=("parallel",),
                vmem_limit_bytes=vmem_limit,
            ),
        )(idx, table)
    else:
        # Large table: leave it in HBM; gather rows with manual DMAs,
        # double-buffered across grid steps.
        grid_spec = pltpu.PrefetchScalarGridSpec(
            num_scalar_prefetch=1,
            grid=grid,
            in_specs=[pl.BlockSpec(memory_space=pl.ANY)],
            out_specs=pl.BlockSpec((bq, embed_dim), lambda i, idx_ref: (i, 0)),
            scratch_shapes=[
                pltpu.VMEM((2, bq, embed_dim), table.dtype),
                pltpu.SemaphoreType.DMA((2, bq)),
            ],
        )
        out = pl.pallas_call(
            functools.partial(_dma_gather_kernel, bq=bq),
            grid_spec=grid_spec,
            out_shape=out_shape,
            compiler_params=pltpu.CompilerParams(
                # Cross-step carried DMA state (prefetch into the other slot)
                # requires a sequential grid axis.
                dimension_semantics=("arbitrary",),
            ),
        )(idx, table)

    if padded != num_queries:
        out = out[:num_queries]
    return out


class Recommender:
    """JAX/Pallas analogue of the PyTorch `Recommender` module.

    `useritem_embeds` is modelled as two embedding tables (user / item).
    When the fused [user; item] table fits the VMEM-resident fast path the
    two lookups of `forward` share a single Pallas gather; otherwise the
    tables are kept separate so each lookup can stay resident on its own.
    """

    def __init__(self, user_table, item_table, user_graph=False, item_graph=False):
        assert user_table.shape[1] == item_table.shape[1]
        assert user_table.dtype == item_table.dtype
        self.num_users = int(user_table.shape[0])
        self.num_items = int(item_table.shape[0])
        self.user_graph = user_graph
        self.item_graph = item_graph

        itemsize = jnp.dtype(user_table.dtype).itemsize
        embed_dim = int(user_table.shape[1])
        fused_bytes = (self.num_users + self.num_items) * embed_dim * itemsize
        self.fused = fused_bytes <= _resident_table_limit_bytes(
            _vmem_capacity_bytes())
        if self.fused:
            self.fused_table = jnp.concatenate([user_table, item_table], axis=0)
            self.user_table = None
            self.item_table = None
        else:
            self.fused_table = None
            self.user_table = user_table
            self.item_table = item_table
        # TODO(synk): the with_neighbor graph-aggregation path of
        # `useritem_embeds` is not modelled (module defaults disable it).

    def forward(self, query_users, query_items, with_attr=False):
        # Mirror the PyTorch squeeze(0) of a leading batch dim.
        if query_users[0].ndim > 1:
            query_users = [jnp.squeeze(x, axis=0) for x in query_users]
        if query_items[0].ndim > 1:
            query_items = [jnp.squeeze(x, axis=0) for x in query_items]
        if not with_attr:
            u_idx = query_users[0].astype(jnp.int32)
            i_idx = query_items[0].astype(jnp.int32)
            if self.fused:
                n_u = int(u_idx.shape[0])
                fused_idx = jnp.concatenate(
                    [u_idx, i_idx + self.num_users], axis=0)
                fused_out = embedding_lookup(self.fused_table, fused_idx)
                query_users = fused_out[:n_u]
                query_items = fused_out[n_u:]
            else:
                query_users = embedding_lookup(self.user_table, u_idx)
                query_items = embedding_lookup(self.item_table, i_idx)
        return query_users, query_items

    __call__ = forward


if __name__ == "__main__":
    key = jax.random.PRNGKey(0)
    k_ut, k_it, k_qu, k_qi, k_odd = jax.random.split(key, 5)

    num_users, num_items, embed_dim = 64, 64, 128
    n_query_users, n_query_items = 8, 8

    # Deterministic synthetic embedding tables (stand-in for useritem_embeds).
    user_table = jax.random.normal(k_ut, (num_users, embed_dim), dtype=jnp.float32)
    item_table = jax.random.normal(k_it, (num_items, embed_dim), dtype=jnp.float32)

    # Query index tensors with a leading dim of 1 (exercises the squeeze path).
    query_user_idx = jax.random.randint(
        k_qu, (1, n_query_users), 0, num_users, dtype=jnp.int32)
    query_item_idx = jax.random.randint(
        k_qi, (1, n_query_items), 0, num_items, dtype=jnp.int32)

    model = Recommender(user_table, item_table)
    user_embeds, item_embeds = model([query_user_idx], [query_item_idx])
    user_embeds = jax.block_until_ready(user_embeds)
    item_embeds = jax.block_until_ready(item_embeds)

    # Reference check against plain-JAX gather.
    ref_users = jnp.take(user_table, jnp.squeeze(query_user_idx, 0), axis=0)
    ref_items = jnp.take(item_table, jnp.squeeze(query_item_idx, 0), axis=0)
    assert user_embeds.shape == (n_query_users, embed_dim)
    assert item_embeds.shape == (n_query_items, embed_dim)
    assert jnp.allclose(user_embeds, ref_users)
    assert jnp.allclose(item_embeds, ref_items)

    # Also exercise (a) the padding path / multi-step resident grid
    # (query count not a tile multiple) and (b) the large-table manual-DMA
    # fallback (cross-step double-buffered prefetch over 2 grid steps).
    odd_idx = jax.random.randint(k_odd, (13,), 0, num_users, dtype=jnp.int32)
    got_resident = jax.block_until_ready(embedding_lookup(user_table, odd_idx))
    got_dma = jax.block_until_ready(
        embedding_lookup(user_table, odd_idx, force_dma=True))
    ref_odd = jnp.take(user_table, odd_idx, axis=0)
    assert got_resident.shape == (13, embed_dim)
    assert jnp.allclose(got_resident, ref_odd)
    assert jnp.allclose(got_dma, ref_odd)

    print("KERNEL_OK")
</pallas_src>

<mosaic_0001>
module attributes {stable_mosaic.version = 11 : i64} {
  func.func @_resident_gather_kernel(%arg0: i32, %arg1: memref<16xi32, #tpu.memory_space<smem>>, %arg2: memref<128x128xf32, #tpu.memory_space<vmem>>, %arg3: memref<16x128xf32, #tpu.memory_space<vmem>>, %arg4: memref<16x!tpu.dma_semaphore, #tpu.memory_space<semaphore_mem>>) attributes {dimension_semantics = [#tpu.dimension_semantics<parallel>], iteration_bounds = array<i64: 1>, scalar_prefetch = 1 : i64, scratch_operands = 1 : i64, tpu.core_type = #tpu.core_type<tc>, window_params = [{pipeline_mode = #tpu.pipeline_mode<synchronous>, transform_indices = @transform_0, window_bounds = array<i64: 128, 128>}, {transform_indices = @transform_1, window_bounds = array<i64: 16, 128>}]} {
    %c16_i32 = arith.constant 16 : i32
    %0 = arith.muli %arg0, %c16_i32 : i32
    %c0_i32 = arith.constant 0 : i32
    %1 = arith.addi %0, %c0_i32 : i32
    %2 = arith.index_cast %1 : i32 to index
    %3 = memref.load %arg1[%2] : memref<16xi32, #tpu.memory_space<smem>>
    %c1_i32 = arith.constant 1 : i32
    %4 = arith.addi %0, %c1_i32 : i32
    %5 = arith.index_cast %4 : i32 to index
    %6 = memref.load %arg1[%5] : memref<16xi32, #tpu.memory_space<smem>>
    %c2_i32 = arith.constant 2 : i32
    %7 = arith.addi %0, %c2_i32 : i32
    %8 = arith.index_cast %7 : i32 to index
    %9 = memref.load %arg1[%8] : memref<16xi32, #tpu.memory_space<smem>>
    %c3_i32 = arith.constant 3 : i32
    %10 = arith.addi %0, %c3_i32 : i32
    %11 = arith.index_cast %10 : i32 to index
    %12 = memref.load %arg1[%11] : memref<16xi32, #tpu.memory_space<smem>>
    %c4_i32 = arith.constant 4 : i32
    %13 = arith.addi %0, %c4_i32 : i32
    %14 = arith.index_cast %13 : i32 to index
    %15 = memref.load %arg1[%14] : memref<16xi32, #tpu.memory_space<smem>>
    %c5_i32 = arith.constant 5 : i32
    %16 = arith.addi %0, %c5_i32 : i32
    %17 = arith.index_cast %16 : i32 to index
    %18 = memref.load %arg1[%17] : memref<16xi32, #tpu.memory_space<smem>>
    %c6_i32 = arith.constant 6 : i32
    %19 = arith.addi %0, %c6_i32 : i32
    %20 = arith.index_cast %19 : i32 to index
    %21 = memref.load %arg1[%20] : memref<16xi32, #tpu.memory_space<smem>>
    %c7_i32 = arith.constant 7 : i32
    %22 = arith.addi %0, %c7_i32 : i32
    %23 = arith.index_cast %22 : i32 to index
    %24 = memref.load %arg1[%23] : memref<16xi32, #tpu.memory_space<smem>>
    %c8_i32 = arith.constant 8 : i32
    %25 = arith.addi %0, %c8_i32 : i32
    %26 = arith.index_cast %25 : i32 to index
    %27 = memref.load %arg1[%26] : memref<16xi32, #tpu.memory_space<smem>>
    %c9_i32 = arith.constant 9 : i32
    %28 = arith.addi %0, %c9_i32 : i32
    %29 = arith.index_cast %28 : i32 to index
    %30 = memref.load %arg1[%29] : memref<16xi32, #tpu.memory_space<smem>>
    %c10_i32 = arith.constant 10 : i32
    %31 = arith.addi %0, %c10_i32 : i32
    %32 = arith.index_cast %31 : i32 to index
    %33 = memref.load %arg1[%32] : memref<16xi32, #tpu.memory_space<smem>>
    %c11_i32 = arith.constant 11 : i32
    %34 = arith.addi %0, %c11_i32 : i32
    %35 = arith.index_cast %34 : i32 to index
    %36 = memref.load %arg1[%35] : memref<16xi32, #tpu.memory_space<smem>>
    %c12_i32 = arith.constant 12 : i32
    %37 = arith.addi %0, %c12_i32 : i32
    %38 = arith.index_cast %37 : i32 to index
    %39 = memref.load %arg1[%38] : memref<16xi32, #tpu.memory_space<smem>>
    %c13_i32 = arith.constant 13 : i32
    %40 = arith.addi %0, %c13_i32 : i32
    %41 = arith.index_cast %40 : i32 to index
    %42 = memref.load %arg1[%41] : memref<16xi32, #tpu.memory_space<smem>>
    %c14_i32 = arith.constant 14 : i32
    %43 = arith.addi %0, %c14_i32 : i32
    %44 = arith.index_cast %43 : i32 to index
    %45 = memref.load %arg1[%44] : memref<16xi32, #tpu.memory_space<smem>>
    %c15_i32 = arith.constant 15 : i32
    %46 = arith.addi %0, %c15_i32 : i32
    %47 = arith.index_cast %46 : i32 to index
    %48 = memref.load %arg1[%47] : memref<16xi32, #tpu.memory_space<smem>>
    %c0_i32_0 = arith.constant 0 : i32
    %c0_i32_1 = arith.constant 0 : i32
    %49 = tpu.memref_slice %arg2[%3, %c0_i32_1] : memref<128x128xf32, #tpu.memory_space<vmem>> -> memref<1x128xf32, #tpu.memory_space<vmem>>
    %c0_i32_2 = arith.constant 0 : i32
    %c0_i32_3 = arith.constant 0 : i32
    %50 = tpu.memref_slice %arg3[%c0_i32_2, %c0_i32_3] : memref<16x128xf32, #tpu.memory_space<vmem>> -> memref<1x128xf32, #tpu.memory_space<vmem>>
    %51 = tpu.memref_slice %arg4[%c0_i32_0] : memref<16x!tpu.dma_semaphore, #tpu.memory_space<semaphore_mem>> -> memref<1x!tpu.dma_semaphore, #tpu.memory_space<semaphore_mem>>
    %52 = tpu.memref_squeeze %51 : memref<1x!tpu.dma_semaphore, #tpu.memory_space<semaphore_mem>> -> memref<!tpu.dma_semaphore, #tpu.memory_space<semaphore_mem>>
    tpu.enqueue_dma source(%49 : memref<1x128xf32, #tpu.memory_space<vmem>>) target(%50 : memref<1x128xf32, #tpu.memory_space<vmem>>) target_semaphore(%52 : memref<!tpu.dma_semaphore, #tpu.memory_space<semaphore_mem>>)
    %c1_i32_4 = arith.constant 1 : i32
    %c0_i32_5 = arith.constant 0 : i32
    %53 = tpu.memref_slice %arg2[%6, %c0_i32_5] : memref<128x128xf32, #tpu.memory_space<vmem>> -> memref<1x128xf32, #tpu.memory_space<vmem>>
    %c1_i32_6 = arith.constant 1 : i32
    %c0_i32_7 = arith.constant 0 : i32
    %54 = tpu.memref_slice %arg3[%c1_i32_6, %c0_i32_7] : memref<16x128xf32, #tpu.memory_space<vmem>> -> memref<1x128xf32, #tpu.memory_space<vmem>>
    %55 = tpu.memref_slice %arg4[%c1_i32_4] : memref<16x!tpu.dma_semaphore, #tpu.memory_space<semaphore_mem>> -> memref<1x!tpu.dma_semaphore, #tpu.memory_space<semaphore_mem>>
    %56 = tpu.memref_squeeze %55 : memref<1x!tpu.dma_semaphore, #tpu.memory_space<semaphore_mem>> -> memref<!tpu.dma_semaphore, #tpu.memory_space<semaphore_mem>>
    tpu.enqueue_dma source(%53 : memref<1x128xf32, #tpu.memory_space<vmem>>) target(%54 : memref<1x128xf32, #tpu.memory_space<vmem>>) target_semaphore(%56 : memref<!tpu.dma_semaphore, #tpu.memory_space<semaphore_mem>>)
    %c2_i32_8 = arith.constant 2 : i32
    %c0_i32_9 = arith.constant 0 : i32
    %57 = tpu.memref_slice %arg2[%9, %c0_i32_9] : memref<128x128xf32, #tpu.memory_space<vmem>> -> memref<1x128xf32, #tpu.memory_space<vmem>>
    %c2_i32_10 = arith.constant 2 : i32
    %c0_i32_11 = arith.constant 0 : i32
    %58 = tpu.memref_slice %arg3[%c2_i32_10, %c0_i32_11] : memref<16x128xf32, #tpu.memory_space<vmem>> -> memref<1x128xf32, #tpu.memory_space<vmem>>
    %59 = tpu.memref_slice %arg4[%c2_i32_8] : memref<16x!tpu.dma_semaphore, #tpu.memory_space<semaphore_mem>> -> memref<1x!tpu.dma_semaphore, #tpu.memory_space<semaphore_mem>>
    %60 = tpu.memref_squeeze %59 : memref<1x!tpu.dma_semaphore, #tpu.memory_space<semaphore_mem>> -> memref<!tpu.dma_semaphore, #tpu.memory_space<semaphore_mem>>
    tpu.enqueue_dma source(%57 : memref<1x128xf32, #tpu.memory_space<vmem>>) target(%58 : memref<1x128xf32, #tpu.memory_space<vmem>>) target_semaphore(%60 : memref<!tpu.dma_semaphore, #tpu.memory_space<semaphore_mem>>)
    %c3_i32_12 = arith.constant 3 : i32
    %c0_i32_13 = arith.constant 0 : i32
    %61 = tpu.memref_slice %arg2[%12, %c0_i32_13] : memref<128x128xf32, #tpu.memory_space<vmem>> -> memref<1x128xf32, #tpu.memory_space<vmem>>
    %c3_i32_14 = arith.constant 3 : i32
    %c0_i32_15 = arith.constant 0 : i32
    %62 = tpu.memref_slice %arg3[%c3_i32_14, %c0_i32_15] : memref<16x128xf32, #tpu.memory_space<vmem>> -> memref<1x128xf32, #tpu.memory_space<vmem>>
    %63 = tpu.memref_slice %arg4[%c3_i32_12] : memref<16x!tpu.dma_semaphore, #tpu.memory_space<semaphore_mem>> -> memref<1x!tpu.dma_semaphore, #tpu.memory_space<semaphore_mem>>
    %64 = tpu.memref_squeeze %63 : memref<1x!tpu.dma_semaphore, #tpu.memory_space<semaphore_mem>> -> memref<!tpu.dma_semaphore, #tpu.memory_space<semaphore_mem>>
    tpu.enqueue_dma source(%61 : memref<1x128xf32, #tpu.memory_space<vmem>>) target(%62 : memref<1x128xf32, #tpu.memory_space<vmem>>) target_semaphore(%64 : memref<!tpu.dma_semaphore, #tpu.memory_space<semaphore_mem>>)
    %c4_i32_16 = arith.constant 4 : i32
    %c0_i32_17 = arith.constant 0 : i32
    %65 = tpu.memref_slice %arg2[%15, %c0_i32_17] : memref<128x128xf32, #tpu.memory_space<vmem>> -> memref<1x128xf32, #tpu.memory_space<vmem>>
    %c4_i32_18 = arith.constant 4 : i32
    %c0_i32_19 = arith.constant 0 : i32
    %66 = tpu.memref_slice %arg3[%c4_i32_18, %c0_i32_19] : memref<16x128xf32, #tpu.memory_space<vmem>> -> memref<1x128xf32, #tpu.memory_space<vmem>>
    %67 = tpu.memref_slice %arg4[%c4_i32_16] : memref<16x!tpu.dma_semaphore, #tpu.memory_space<semaphore_mem>> -> memref<1x!tpu.dma_semaphore, #tpu.memory_space<semaphore_mem>>
    %68 = tpu.memref_squeeze %67 : memref<1x!tpu.dma_semaphore, #tpu.memory_space<semaphore_mem>> -> memref<!tpu.dma_semaphore, #tpu.memory_space<semaphore_mem>>
    tpu.enqueue_dma source(%65 : memref<1x128xf32, #tpu.memory_space<vmem>>) target(%66 : memref<1x128xf32, #tpu.memory_space<vmem>>) target_semaphore(%68 : memref<!tpu.dma_semaphore, #tpu.memory_space<semaphore_mem>>)
    %c5_i32_20 = arith.constant 5 : i32
    %c0_i32_21 = arith.constant 0 : i32
    %69 = tpu.memref_slice %arg2[%18, %c0_i32_21] : memref<128x128xf32, #tpu.memory_space<vmem>> -> memref<1x128xf32, #tpu.memory_space<vmem>>
    %c5_i32_22 = arith.constant 5 : i32
    %c0_i32_23 = arith.constant 0 : i32
    %70 = tpu.memref_slice %arg3[%c5_i32_22, %c0_i32_23] : memref<16x128xf32, #tpu.memory_space<vmem>> -> memref<1x128xf32, #tpu.memory_space<vmem>>
    %71 = tpu.memref_slice %arg4[%c5_i32_20] : memref<16x!tpu.dma_semaphore, #tpu.memory_space<semaphore_mem>> -> memref<1x!tpu.dma_semaphore, #tpu.memory_space<semaphore_mem>>
    %72 = tpu.memref_squeeze %71 : memref<1x!tpu.dma_semaphore, #tpu.memory_space<semaphore_mem>> -> memref<!tpu.dma_semaphore, #tpu.memory_space<semaphore_mem>>
    tpu.enqueue_dma source(%69 : memref<1x128xf32, #tpu.memory_space<vmem>>) target(%70 : memref<1x128xf32, #tpu.memory_space<vmem>>) target_semaphore(%72 : memref<!tpu.dma_semaphore, #tpu.memory_space<semaphore_mem>>)
    %c6_i32_24 = arith.constant 6 : i32
    %c0_i32_25 = arith.constant 0 : i32
    %73 = tpu.memref_slice %arg2[%21, %c0_i32_25] : memref<128x128xf32, #tpu.memory_space<vmem>> -> memref<1x128xf32, #tpu.memory_space<vmem>>
    %c6_i32_26 = arith.constant 6 : i32
    %c0_i32_27 = arith.constant 0 : i32
    %74 = tpu.memref_slice %arg3[%c6_i32_26, %c0_i32_27] : memref<16x128xf32, #tpu.memory_space<vmem>> -> memref<1x128xf32, #tpu.memory_space<vmem>>
    %75 = tpu.memref_slice %arg4[%c6_i32_24] : memref<16x!tpu.dma_semaphore, #tpu.memory_space<semaphore_mem>> -> memref<1x!tpu.dma_semaphore, #tpu.memory_space<semaphore_mem>>
    %76 = tpu.memref_squeeze %75 : memref<1x!tpu.dma_semaphore, #tpu.memory_space<semaphore_mem>> -> memref<!tpu.dma_semaphore, #tpu.memory_space<semaphore_mem>>
    tpu.enqueue_dma source(%73 : memref<1x128xf32, #tpu.memory_space<vmem>>) target(%74 : memref<1x128xf32, #tpu.memory_space<vmem>>) target_semaphore(%76 : memref<!tpu.dma_semaphore, #tpu.memory_space<semaphore_mem>>)
    %c7_i32_28 = arith.constant 7 : i32
    %c0_i32_29 = arith.constant 0 : i32
    %77 = tpu.memref_slice %arg2[%24, %c0_i32_29] : memref<128x128xf32, #tpu.memory_space<vmem>> -> memref<1x128xf32, #tpu.memory_space<vmem>>
    %c7_i32_30 = arith.constant 7 : i32
    %c0_i32_31 = arith.constant 0 : i32
    %78 = tpu.memref_slice %arg3[%c7_i32_30, %c0_i32_31] : memref<16x128xf32, #tpu.memory_space<vmem>> -> memref<1x128xf32, #tpu.memory_space<vmem>>
    %79 = tpu.memref_slice %arg4[%c7_i32_28] : memref<16x!tpu.dma_semaphore, #tpu.memory_space<semaphore_mem>> -> memref<1x!tpu.dma_semaphore, #tpu.memory_space<semaphore_mem>>
    %80 = tpu.memref_squeeze %79 : memref<1x!tpu.dma_semaphore, #tpu.memory_space<semaphore_mem>> -> memref<!tpu.dma_semaphore, #tpu.memory_space<semaphore_mem>>
    tpu.enqueue_dma source(%77 : memref<1x128xf32, #tpu.memory_space<vmem>>) target(%78 : memref<1x128xf32, #tpu.memory_space<vmem>>) target_semaphore(%80 : memref<!tpu.dma_semaphore, #tpu.memory_space<semaphore_mem>>)
    %c8_i32_32 = arith.constant 8 : i32
    %c0_i32_33 = arith.constant 0 : i32
    %81 = tpu.memref_slice %arg2[%27, %c0_i32_33] : memref<128x128xf32, #tpu.memory_space<vmem>> -> memref<1x128xf32, #tpu.memory_space<vmem>>
    %c8_i32_34 = arith.constant 8 : i32
    %c0_i32_35 = arith.constant 0 : i32
    %82 = tpu.memref_slice %arg3[%c8_i32_34, %c0_i32_35] : memref<16x128xf32, #tpu.memory_space<vmem>> -> memref<1x128xf32, #tpu.memory_space<vmem>>
    %83 = tpu.memref_slice %arg4[%c8_i32_32] : memref<16x!tpu.dma_semaphore, #tpu.memory_space<semaphore_mem>> -> memref<1x!tpu.dma_semaphore, #tpu.memory_space<semaphore_mem>>
    %84 = tpu.memref_squeeze %83 : memref<1x!tpu.dma_semaphore, #tpu.memory_space<semaphore_mem>> -> memref<!tpu.dma_semaphore, #tpu.memory_space<semaphore_mem>>
    tpu.enqueue_dma source(%81 : memref<1x128xf32, #tpu.memory_space<vmem>>) target(%82 : memref<1x128xf32, #tpu.memory_space<vmem>>) target_semaphore(%84 : memref<!tpu.dma_semaphore, #tpu.memory_space<semaphore_mem>>)
    %c9_i32_36 = arith.constant 9 : i32
    %c0_i32_37 = arith.constant 0 : i32
    %85 = tpu.memref_slice %arg2[%30, %c0_i32_37] : memref<128x128xf32, #tpu.memory_space<vmem>> -> memref<1x128xf32, #tpu.memory_space<vmem>>
    %c9_i32_38 = arith.constant 9 : i32
    %c0_i32_39 = arith.constant 0 : i32
    %86 = tpu.memref_slice %arg3[%c9_i32_38, %c0_i32_39] : memref<16x128xf32, #tpu.memory_space<vmem>> -> memref<1x128xf32, #tpu.memory_space<vmem>>
    %87 = tpu.memref_slice %arg4[%c9_i32_36] : memref<16x!tpu.dma_semaphore, #tpu.memory_space<semaphore_mem>> -> memref<1x!tpu.dma_semaphore, #tpu.memory_space<semaphore_mem>>
    %88 = tpu.memref_squeeze %87 : memref<1x!tpu.dma_semaphore, #tpu.memory_space<semaphore_mem>> -> memref<!tpu.dma_semaphore, #tpu.memory_space<semaphore_mem>>
    tpu.enqueue_dma source(%85 : memref<1x128xf32, #tpu.memory_space<vmem>>) target(%86 : memref<1x128xf32, #tpu.memory_space<vmem>>) target_semaphore(%88 : memref<!tpu.dma_semaphore, #tpu.memory_space<semaphore_mem>>)
    %c10_i32_40 = arith.constant 10 : i32
    %c0_i32_41 = arith.constant 0 : i32
    %89 = tpu.memref_slice %arg2[%33, %c0_i32_41] : memref<128x128xf32, #tpu.memory_space<vmem>> -> memref<1x128xf32, #tpu.memory_space<vmem>>
    %c10_i32_42 = arith.constant 10 : i32
    %c0_i32_43 = arith.constant 0 : i32
    %90 = tpu.memref_slice %arg3[%c10_i32_42, %c0_i32_43] : memref<16x128xf32, #tpu.memory_space<vmem>> -> memref<1x128xf32, #tpu.memory_space<vmem>>
    %91 = tpu.memref_slice %arg4[%c10_i32_40] : memref<16x!tpu.dma_semaphore, #tpu.memory_space<semaphore_mem>> -> memref<1x!tpu.dma_semaphore, #tpu.memory_space<semaphore_mem>>
    %92 = tpu.memref_squeeze %91 : memref<1x!tpu.dma_semaphore, #tpu.memory_space<semaphore_mem>> -> memref<!tpu.dma_semaphore, #tpu.memory_space<semaphore_mem>>
    tpu.enqueue_dma source(%89 : memref<1x128xf32, #tpu.memory_space<vmem>>) target(%90 : memref<1x128xf32, #tpu.memory_space<vmem>>) target_semaphore(%92 : memref<!tpu.dma_semaphore, #tpu.memory_space<semaphore_mem>>)
    %c11_i32_44 = arith.constant 11 : i32
    %c0_i32_45 = arith.constant 0 : i32
    %93 = tpu.memref_slice %arg2[%36, %c0_i32_45] : memref<128x128xf32, #tpu.memory_space<vmem>> -> memref<1x128xf32, #tpu.memory_space<vmem>>
    %c11_i32_46 = arith.constant 11 : i32
    %c0_i32_47 = arith.constant 0 : i32
    %94 = tpu.memref_slice %arg3[%c11_i32_46, %c0_i32_47] : memref<16x128xf32, #tpu.memory_space<vmem>> -> memref<1x128xf32, #tpu.memory_space<vmem>>
    %95 = tpu.memref_slice %arg4[%c11_i32_44] : memref<16x!tpu.dma_semaphore, #tpu.memory_space<semaphore_mem>> -> memref<1x!tpu.dma_semaphore, #tpu.memory_space<semaphore_mem>>
    %96 = tpu.memref_squeeze %95 : memref<1x!tpu.dma_semaphore, #tpu.memory_space<semaphore_mem>> -> memref<!tpu.dma_semaphore, #tpu.memory_space<semaphore_mem>>
    tpu.enqueue_dma source(%93 : memref<1x128xf32, #tpu.memory_space<vmem>>) target(%94 : memref<1x128xf32, #tpu.memory_space<vmem>>) target_semaphore(%96 : memref<!tpu.dma_semaphore, #tpu.memory_space<semaphore_mem>>)
    %c12_i32_48 = arith.constant 12 : i32
    %c0_i32_49 = arith.constant 0 : i32
    %97 = tpu.memref_slice %arg2[%39, %c0_i32_49] : memref<128x128xf32, #tpu.memory_space<vmem>> -> memref<1x128xf32, #tpu.memory_space<vmem>>
    %c12_i32_50 = arith.constant 12 : i32
    %c0_i32_51 = arith.constant 0 : i32
    %98 = tpu.memref_slice %arg3[%c12_i32_50, %c0_i32_51] : memref<16x128xf32, #tpu.memory_space<vmem>> -> memref<1x128xf32, #tpu.memory_space<vmem>>
    %99 = tpu.memref_slice %arg4[%c12_i32_48] : memref<16x!tpu.dma_semaphore, #tpu.memory_space<semaphore_mem>> -> memref<1x!tpu.dma_semaphore, #tpu.memory_space<semaphore_mem>>
    %100 = tpu.memref_squeeze %99 : memref<1x!tpu.dma_semaphore, #tpu.memory_space<semaphore_mem>> -> memref<!tpu.dma_semaphore, #tpu.memory_space<semaphore_mem>>
    tpu.enqueue_dma source(%97 : memref<1x128xf32, #tpu.memory_space<vmem>>) target(%98 : memref<1x128xf32, #tpu.memory_space<vmem>>) target_semaphore(%100 : memref<!tpu.dma_semaphore, #tpu.memory_space<semaphore_mem>>)
    %c13_i32_52 = arith.constant 13 : i32
    %c0_i32_53 = arith.constant 0 : i32
    %101 = tpu.memref_slice %arg2[%42, %c0_i32_53] : memref<128x128xf32, #tpu.memory_space<vmem>> -> memref<1x128xf32, #tpu.memory_space<vmem>>
    %c13_i32_54 = arith.constant 13 : i32
    %c0_i32_55 = arith.constant 0 : i32
    %102 = tpu.memref_slice %arg3[%c13_i32_54, %c0_i32_55] : memref<16x128xf32, #tpu.memory_space<vmem>> -> memref<1x128xf32, #tpu.memory_space<vmem>>
    %103 = tpu.memref_slice %arg4[%c13_i32_52] : memref<16x!tpu.dma_semaphore, #tpu.memory_space<semaphore_mem>> -> memref<1x!tpu.dma_semaphore, #tpu.memory_space<semaphore_mem>>
    %104 = tpu.memref_squeeze %103 : memref<1x!tpu.dma_semaphore, #tpu.memory_space<semaphore_mem>> -> memref<!tpu.dma_semaphore, #tpu.memory_space<semaphore_mem>>
    tpu.enqueue_dma source(%101 : memref<1x128xf32, #tpu.memory_space<vmem>>) target(%102 : memref<1x128xf32, #tpu.memory_space<vmem>>) target_semaphore(%104 : memref<!tpu.dma_semaphore, #tpu.memory_space<semaphore_mem>>)
    %c14_i32_56 = arith.constant 14 : i32
    %c0_i32_57 = arith.constant 0 : i32
    %105 = tpu.memref_slice %arg2[%45, %c0_i32_57] : memref<128x128xf32, #tpu.memory_space<vmem>> -> memref<1x128xf32, #tpu.memory_space<vmem>>
    %c14_i32_58 = arith.constant 14 : i32
    %c0_i32_59 = arith.constant 0 : i32
    %106 = tpu.memref_slice %arg3[%c14_i32_58, %c0_i32_59] : memref<16x128xf32, #tpu.memory_space<vmem>> -> memref<1x128xf32, #tpu.memory_space<vmem>>
    %107 = tpu.memref_slice %arg4[%c14_i32_56] : memref<16x!tpu.dma_semaphore, #tpu.memory_space<semaphore_mem>> -> memref<1x!tpu.dma_semaphore, #tpu.memory_space<semaphore_mem>>
    %108 = tpu.memref_squeeze %107 : memref<1x!tpu.dma_semaphore, #tpu.memory_space<semaphore_mem>> -> memref<!tpu.dma_semaphore, #tpu.memory_space<semaphore_mem>>
    tpu.enqueue_dma source(%105 : memref<1x128xf32, #tpu.memory_space<vmem>>) target(%106 : memref<1x128xf32, #tpu.memory_space<vmem>>) target_semaphore(%108 : memref<!tpu.dma_semaphore, #tpu.memory_space<semaphore_mem>>)
    %c15_i32_60 = arith.constant 15 : i32
    %c0_i32_61 = arith.constant 0 : i32
    %109 = tpu.memref_slice %arg2[%48, %c0_i32_61] : memref<128x128xf32, #tpu.memory_space<vmem>> -> memref<1x128xf32, #tpu.memory_space<vmem>>
    %c15_i32_62 = arith.constant 15 : i32
    %c0_i32_63 = arith.constant 0 : i32
    %110 = tpu.memref_slice %arg3[%c15_i32_62, %c0_i32_63] : memref<16x128xf32, #tpu.memory_space<vmem>> -> memref<1x128xf32, #tpu.memory_space<vmem>>
    %111 = tpu.memref_slice %arg4[%c15_i32_60] : memref<16x!tpu.dma_semaphore, #tpu.memory_space<semaphore_mem>> -> memref<1x!tpu.dma_semaphore, #tpu.memory_space<semaphore_mem>>
    %112 = tpu.memref_squeeze %111 : memref<1x!tpu.dma_semaphore, #tpu.memory_space<semaphore_mem>> -> memref<!tpu.dma_semaphore, #tpu.memory_space<semaphore_mem>>
    tpu.enqueue_dma source(%109 : memref<1x128xf32, #tpu.memory_space<vmem>>) target(%110 : memref<1x128xf32, #tpu.memory_space<vmem>>) target_semaphore(%112 : memref<!tpu.dma_semaphore, #tpu.memory_space<semaphore_mem>>)
    %c0_i32_64 = arith.constant 0 : i32
    %c0_i32_65 = arith.constant 0 : i32
    %113 = tpu.memref_slice %arg2[%3, %c0_i32_65] : memref<128x128xf32, #tpu.memory_space<vmem>> -> memref<1x128xf32, #tpu.memory_space<vmem>>
    %c0_i32_66 = arith.constant 0 : i32
    %c0_i32_67 = arith.constant 0 : i32
    %114 = tpu.memref_slice %arg3[%c0_i32_66, %c0_i32_67] : memref<16x128xf32, #tpu.memory_space<vmem>> -> memref<1x128xf32, #tpu.memory_space<vmem>>
    %115 = tpu.memref_slice %arg4[%c0_i32_64] : memref<16x!tpu.dma_semaphore, #tpu.memory_space<semaphore_mem>> -> memref<1x!tpu.dma_semaphore, #tpu.memory_space<semaphore_mem>>
    %116 = tpu.memref_squeeze %115 : memref<1x!tpu.dma_semaphore, #tpu.memory_space<semaphore_mem>> -> memref<!tpu.dma_semaphore, #tpu.memory_space<semaphore_mem>>
    tpu.wait_dma2 semaphore(%116 : memref<!tpu.dma_semaphore, #tpu.memory_space<semaphore_mem>>) src(%113 : memref<1x128xf32, #tpu.memory_space<vmem>>) dst(%114 : memref<1x128xf32, #tpu.memory_space<vmem>>)
    %c1_i32_68 = arith.constant 1 : i32
    %c0_i32_69 = arith.constant 0 : i32
    %117 = tpu.memref_slice %arg2[%6, %c0_i32_69] : memref<128x128xf32, #tpu.memory_space<vmem>> -> memref<1x128xf32, #tpu.memory_space<vmem>>
    %c1_i32_70 = arith.constant 1 : i32
    %c0_i32_71 = arith.constant 0 : i32
    %118 = tpu.memref_slice %arg3[%c1_i32_70, %c0_i32_71] : memref<16x128xf32, #tpu.memory_space<vmem>> -> memref<1x128xf32, #tpu.memory_space<vmem>>
    %119 = tpu.memref_slice %arg4[%c1_i32_68] : memref<16x!tpu.dma_semaphore, #tpu.memory_space<semaphore_mem>> -> memref<1x!tpu.dma_semaphore, #tpu.memory_space<semaphore_mem>>
    %120 = tpu.memref_squeeze %119 : memref<1x!tpu.dma_semaphore, #tpu.memory_space<semaphore_mem>> -> memref<!tpu.dma_semaphore, #tpu.memory_space<semaphore_mem>>
    tpu.wait_dma2 semaphore(%120 : memref<!tpu.dma_semaphore, #tpu.memory_space<semaphore_mem>>) src(%117 : memref<1x128xf32, #tpu.memory_space<vmem>>) dst(%118 : memref<1x128xf32, #tpu.memory_space<vmem>>)
    %c2_i32_72 = arith.constant 2 : i32
    %c0_i32_73 = arith.constant 0 : i32
    %121 = tpu.memref_slice %arg2[%9, %c0_i32_73] : memref<128x128xf32, #tpu.memory_space<vmem>> -> memref<1x128xf32, #tpu.memory_space<vmem>>
    %c2_i32_74 = arith.constant 2 : i32
    %c0_i32_75 = arith.constant 0 : i32
    %122 = tpu.memref_slice %arg3[%c2_i32_74, %c0_i32_75] : memref<16x128xf32, #tpu.memory_space<vmem>> -> memref<1x128xf32, #tpu.memory_space<vmem>>
    %123 = tpu.memref_slice %arg4[%c2_i32_72] : memref<16x!tpu.dma_semaphore, #tpu.memory_space<semaphore_mem>> -> memref<1x!tpu.dma_semaphore, #tpu.memory_space<semaphore_mem>>
    %124 = tpu.memref_squeeze %123 : memref<1x!tpu.dma_semaphore, #tpu.memory_space<semaphore_mem>> -> memref<!tpu.dma_semaphore, #tpu.memory_space<semaphore_mem>>
    tpu.wait_dma2 semaphore(%124 : memref<!tpu.dma_semaphore, #tpu.memory_space<semaphore_mem>>) src(%121 : memref<1x128xf32, #tpu.memory_space<vmem>>) dst(%122 : memref<1x128xf32, #tpu.memory_space<vmem>>)
    %c3_i32_76 = arith.constant 3 : i32
    %c0_i32_77 = arith.constant 0 : i32
    %125 = tpu.memref_slice %arg2[%12, %c0_i32_77] : memref<128x128xf32, #tpu.memory_space<vmem>> -> memref<1x128xf32, #tpu.memory_space<vmem>>
    %c3_i32_78 = arith.constant 3 : i32
    %c0_i32_79 = arith.constant 0 : i32
    %126 = tpu.memref_slice %arg3[%c3_i32_78, %c0_i32_79] : memref<16x128xf32, #tpu.memory_space<vmem>> -> memref<1x128xf32, #tpu.memory_space<vmem>>
    %127 = tpu.memref_slice %arg4[%c3_i32_76] : memref<16x!tpu.dma_semaphore, #tpu.memory_space<semaphore_mem>> -> memref<1x!tpu.dma_semaphore, #tpu.memory_space<semaphore_mem>>
    %128 = tpu.memref_squeeze %127 : memref<1x!tpu.dma_semaphore, #tpu.memory_space<semaphore_mem>> -> memref<!tpu.dma_semaphore, #tpu.memory_space<semaphore_mem>>
    tpu.wait_dma2 semaphore(%128 : memref<!tpu.dma_semaphore, #tpu.memory_space<semaphore_mem>>) src(%125 : memref<1x128xf32, #tpu.memory_space<vmem>>) dst(%126 : memref<1x128xf32, #tpu.memory_space<vmem>>)
    %c4_i32_80 = arith.constant 4 : i32
    %c0_i32_81 = arith.constant 0 : i32
    %129 = tpu.memref_slice %arg2[%15, %c0_i32_81] : memref<128x128xf32, #tpu.memory_space<vmem>> -> memref<1x128xf32, #tpu.memory_space<vmem>>
    %c4_i32_82 = arith.constant 4 : i32
    %c0_i32_83 = arith.constant 0 : i32
    %130 = tpu.memref_slice %arg3[%c4_i32_82, %c0_i32_83] : memref<16x128xf32, #tpu.memory_space<vmem>> -> memref<1x128xf32, #tpu.memory_space<vmem>>
    %131 = tpu.memref_slice %arg4[%c4_i32_80] : memref<16x!tpu.dma_semaphore, #tpu.memory_space<semaphore_mem>> -> memref<1x!tpu.dma_semaphore, #tpu.memory_space<semaphore_mem>>
    %132 = tpu.memref_squeeze %131 : memref<1x!tpu.dma_semaphore, #tpu.memory_space<semaphore_mem>> -> memref<!tpu.dma_semaphore, #tpu.memory_space<semaphore_mem>>
    tpu.wait_dma2 semaphore(%132 : memref<!tpu.dma_semaphore, #tpu.memory_space<semaphore_mem>>) src(%129 : memref<1x128xf32, #tpu.memory_space<vmem>>) dst(%130 : memref<1x128xf32, #tpu.memory_space<vmem>>)
    %c5_i32_84 = arith.constant 5 : i32
    %c0_i32_85 = arith.constant 0 : i32
    %133 = tpu.memref_slice %arg2[%18, %c0_i32_85] : memref<128x128xf32, #tpu.memory_space<vmem>> -> memref<1x128xf32, #tpu.memory_space<vmem>>
    %c5_i32_86 = arith.constant 5 : i32
    %c0_i32_87 = arith.constant 0 : i32
    %134 = tpu.memref_slice %arg3[%c5_i32_86, %c0_i32_87] : memref<16x128xf32, #tpu.memory_space<vmem>> -> memref<1x128xf32, #tpu.memory_space<vmem>>
    %135 = tpu.memref_slice %arg4[%c5_i32_84] : memref<16x!tpu.dma_semaphore, #tpu.memory_space<semaphore_mem>> -> memref<1x!tpu.dma_semaphore, #tpu.memory_space<semaphore_mem>>
    %136 = tpu.memref_squeeze %135 : memref<1x!tpu.dma_semaphore, #tpu.memory_space<semaphore_mem>> -> memref<!tpu.dma_semaphore, #tpu.memory_space<semaphore_mem>>
    tpu.wait_dma2 semaphore(%136 : memref<!tpu.dma_semaphore, #tpu.memory_space<semaphore_mem>>) src(%133 : memref<1x128xf32, #tpu.memory_space<vmem>>) dst(%134 : memref<1x128xf32, #tpu.memory_space<vmem>>)
    %c6_i32_88 = arith.constant 6 : i32
    %c0_i32_89 = arith.constant 0 : i32
    %137 = tpu.memref_slice %arg2[%21, %c0_i32_89] : memref<128x128xf32, #tpu.memory_space<vmem>> -> memref<1x128xf32, #tpu.memory_space<vmem>>
    %c6_i32_90 = arith.constant 6 : i32
    %c0_i32_91 = arith.constant 0 : i32
    %138 = tpu.memref_slice %arg3[%c6_i32_90, %c0_i32_91] : memref<16x128xf32, #tpu.memory_space<vmem>> -> memref<1x128xf32, #tpu.memory_space<vmem>>
    %139 = tpu.memref_slice %arg4[%c6_i32_88] : memref<16x!tpu.dma_semaphore, #tpu.memory_space<semaphore_mem>> -> memref<1x!tpu.dma_semaphore, #tpu.memory_space<semaphore_mem>>
    %140 = tpu.memref_squeeze %139 : memref<1x!tpu.dma_semaphore, #tpu.memory_space<semaphore_mem>> -> memref<!tpu.dma_semaphore, #tpu.memory_space<semaphore_mem>>
    tpu.wait_dma2 semaphore(%140 : memref<!tpu.dma_semaphore, #tpu.memory_space<semaphore_mem>>) src(%137 : memref<1x128xf32, #tpu.memory_space<vmem>>) dst(%138 : memref<1x128xf32, #tpu.memory_space<vmem>>)
    %c7_i32_92 = arith.constant 7 : i32
    %c0_i32_93 = arith.constant 0 : i32
    %141 = tpu.memref_slice %arg2[%24, %c0_i32_93] : memref<128x128xf32, #tpu.memory_space<vmem>> -> memref<1x128xf32, #tpu.memory_space<vmem>>
    %c7_i32_94 = arith.constant 7 : i32
    %c0_i32_95 = arith.constant 0 : i32
    %142 = tpu.memref_slice %arg3[%c7_i32_94, %c0_i32_95] : memref<16x128xf32, #tpu.memory_space<vmem>> -> memref<1x128xf32, #tpu.memory_space<vmem>>
    %143 = tpu.memref_slice %arg4[%c7_i32_92] : memref<16x!tpu.dma_semaphore, #tpu.memory_space<semaphore_mem>> -> memref<1x!tpu.dma_semaphore, #tpu.memory_space<semaphore_mem>>
    %144 = tpu.memref_squeeze %143 : memref<1x!tpu.dma_semaphore, #tpu.memory_space<semaphore_mem>> -> memref<!tpu.dma_semaphore, #tpu.memory_space<semaphore_mem>>
    tpu.wait_dma2 semaphore(%144 : memref<!tpu.dma_semaphore, #tpu.memory_space<semaphore_mem>>) src(%141 : memref<1x128xf32, #tpu.memory_space<vmem>>) dst(%142 : memref<1x128xf32, #tpu.memory_space<vmem>>)
    %c8_i32_96 = arith.constant 8 : i32
    %c0_i32_97 = arith.constant 0 : i32
    %145 = tpu.memref_slice %arg2[%27, %c0_i32_97] : memref<128x128xf32, #tpu.memory_space<vmem>> -> memref<1x128xf32, #tpu.memory_space<vmem>>
    %c8_i32_98 = arith.constant 8 : i32
    %c0_i32_99 = arith.constant 0 : i32
    %146 = tpu.memref_slice %arg3[%c8_i32_98, %c0_i32_99] : memref<16x128xf32, #tpu.memory_space<vmem>> -> memref<1x128xf32, #tpu.memory_space<vmem>>
    %147 = tpu.memref_slice %arg4[%c8_i32_96] : memref<16x!tpu.dma_semaphore, #tpu.memory_space<semaphore_mem>> -> memref<1x!tpu.dma_semaphore, #tpu.memory_space<semaphore_mem>>
    %148 = tpu.memref_squeeze %147 : memref<1x!tpu.dma_semaphore, #tpu.memory_space<semaphore_mem>> -> memref<!tpu.dma_semaphore, #tpu.memory_space<semaphore_mem>>
    tpu.wait_dma2 semaphore(%148 : memref<!tpu.dma_semaphore, #tpu.memory_space<semaphore_mem>>) src(%145 : memref<1x128xf32, #tpu.memory_space<vmem>>) dst(%146 : memref<1x128xf32, #tpu.memory_space<vmem>>)
    %c9_i32_100 = arith.constant 9 : i32
    %c0_i32_101 = arith.constant 0 : i32
    %149 = tpu.memref_slice %arg2[%30, %c0_i32_101] : memref<128x128xf32, #tpu.memory_space<vmem>> -> memref<1x128xf32, #tpu.memory_space<vmem>>
    %c9_i32_102 = arith.constant 9 : i32
    %c0_i32_103 = arith.constant 0 : i32
    %150 = tpu.memref_slice %arg3[%c9_i32_102, %c0_i32_103] : memref<16x128xf32, #tpu.memory_space<vmem>> -> memref<1x128xf32, #tpu.memory_space<vmem>>
    %151 = tpu.memref_slice %arg4[%c9_i32_100] : memref<16x!tpu.dma_semaphore, #tpu.memory_space<semaphore_mem>> -> memref<1x!tpu.dma_semaphore, #tpu.memory_space<semaphore_mem>>
    %152 = tpu.memref_squeeze %151 : memref<1x!tpu.dma_semaphore, #tpu.memory_space<semaphore_mem>> -> memref<!tpu.dma_semaphore, #tpu.memory_space<semaphore_mem>>
    tpu.wait_dma2 semaphore(%152 : memref<!tpu.dma_semaphore, #tpu.memory_space<semaphore_mem>>) src(%149 : memref<1x128xf32, #tpu.memory_space<vmem>>) dst(%150 : memref<1x128xf32, #tpu.memory_space<vmem>>)
    %c10_i32_104 = arith.constant 10 : i32
    %c0_i32_105 = arith.constant 0 : i32
    %153 = tpu.memref_slice %arg2[%33, %c0_i32_105] : memref<128x128xf32, #tpu.memory_space<vmem>> -> memref<1x128xf32, #tpu.memory_space<vmem>>
    %c10_i32_106 = arith.constant 10 : i32
    %c0_i32_107 = arith.constant 0 : i32
    %154 = tpu.memref_slice %arg3[%c10_i32_106, %c0_i32_107] : memref<16x128xf32, #tpu.memory_space<vmem>> -> memref<1x128xf32, #tpu.memory_space<vmem>>
    %155 = tpu.memref_slice %arg4[%c10_i32_104] : memref<16x!tpu.dma_semaphore, #tpu.memory_space<semaphore_mem>> -> memref<1x!tpu.dma_semaphore, #tpu.memory_space<semaphore_mem>>
    %156 = tpu.memref_squeeze %155 : memref<1x!tpu.dma_semaphore, #tpu.memory_space<semaphore_mem>> -> memref<!tpu.dma_semaphore, #tpu.memory_space<semaphore_mem>>
    tpu.wait_dma2 semaphore(%156 : memref<!tpu.dma_semaphore, #tpu.memory_space<semaphore_mem>>) src(%153 : memref<1x128xf32, #tpu.memory_space<vmem>>) dst(%154 : memref<1x128xf32, #tpu.memory_space<vmem>>)
    %c11_i32_108 = arith.constant 11 : i32
    %c0_i32_109 = arith.constant 0 : i32
    %157 = tpu.memref_slice %arg2[%36, %c0_i32_109] : memref<128x128xf32, #tpu.memory_space<vmem>> -> memref<1x128xf32, #tpu.memory_space<vmem>>
    %c11_i32_110 = arith.constant 11 : i32
    %c0_i32_111 = arith.constant 0 : i32
    %158 = tpu.memref_slice %arg3[%c11_i32_110, %c0_i32_111] : memref<16x128xf32, #tpu.memory_space<vmem>> -> memref<1x128xf32, #tpu.memory_space<vmem>>
    %159 = tpu.memref_slice %arg4[%c11_i32_108] : memref<16x!tpu.dma_semaphore, #tpu.memory_space<semaphore_mem>> -> memref<1x!tpu.dma_semaphore, #tpu.memory_space<semaphore_mem>>
    %160 = tpu.memref_squeeze %159 : memref<1x!tpu.dma_semaphore, #tpu.memory_space<semaphore_mem>> -> memref<!tpu.dma_semaphore, #tpu.memory_space<semaphore_mem>>
    tpu.wait_dma2 semaphore(%160 : memref<!tpu.dma_semaphore, #tpu.memory_space<semaphore_mem>>) src(%157 : memref<1x128xf32, #tpu.memory_space<vmem>>) dst(%158 : memref<1x128xf32, #tpu.memory_space<vmem>>)
    %c12_i32_112 = arith.constant 12 : i32
    %c0_i32_113 = arith.constant 0 : i32
    %161 = tpu.memref_slice %arg2[%39, %c0_i32_113] : memref<128x128xf32, #tpu.memory_space<vmem>> -> memref<1x128xf32, #tpu.memory_space<vmem>>
    %c12_i32_114 = arith.constant 12 : i32
    %c0_i32_115 = arith.constant 0 : i32
    %162 = tpu.memref_slice %arg3[%c12_i32_114, %c0_i32_115] : memref<16x128xf32, #tpu.memory_space<vmem>> -> memref<1x128xf32, #tpu.memory_space<vmem>>
    %163 = tpu.memref_slice %arg4[%c12_i32_112] : memref<16x!tpu.dma_semaphore, #tpu.memory_space<semaphore_mem>> -> memref<1x!tpu.dma_semaphore, #tpu.memory_space<semaphore_mem>>
    %164 = tpu.memref_squeeze %163 : memref<1x!tpu.dma_semaphore, #tpu.memory_space<semaphore_mem>> -> memref<!tpu.dma_semaphore, #tpu.memory_space<semaphore_mem>>
    tpu.wait_dma2 semaphore(%164 : memref<!tpu.dma_semaphore, #tpu.memory_space<semaphore_mem>>) src(%161 : memref<1x128xf32, #tpu.memory_space<vmem>>) dst(%162 : memref<1x128xf32, #tpu.memory_space<vmem>>)
    %c13_i32_116 = arith.constant 13 : i32
    %c0_i32_117 = arith.constant 0 : i32
    %165 = tpu.memref_slice %arg2[%42, %c0_i32_117] : memref<128x128xf32, #tpu.memory_space<vmem>> -> memref<1x128xf32, #tpu.memory_space<vmem>>
    %c13_i32_118 = arith.constant 13 : i32
    %c0_i32_119 = arith.constant 0 : i32
    %166 = tpu.memref_slice %arg3[%c13_i32_118, %c0_i32_119] : memref<16x128xf32, #tpu.memory_space<vmem>> -> memref<1x128xf32, #tpu.memory_space<vmem>>
    %167 = tpu.memref_slice %arg4[%c13_i32_116] : memref<16x!tpu.dma_semaphore, #tpu.memory_space<semaphore_mem>> -> memref<1x!tpu.dma_semaphore, #tpu.memory_space<semaphore_mem>>
    %168 = tpu.memref_squeeze %167 : memref<1x!tpu.dma_semaphore, #tpu.memory_space<semaphore_mem>> -> memref<!tpu.dma_semaphore, #tpu.memory_space<semaphore_mem>>
    tpu.wait_dma2 semaphore(%168 : memref<!tpu.dma_semaphore, #tpu.memory_space<semaphore_mem>>) src(%165 : memref<1x128xf32, #tpu.memory_space<vmem>>) dst(%166 : memref<1x128xf32, #tpu.memory_space<vmem>>)
    %c14_i32_120 = arith.constant 14 : i32
    %c0_i32_121 = arith.constant 0 : i32
    %169 = tpu.memref_slice %arg2[%45, %c0_i32_121] : memref<128x128xf32, #tpu.memory_space<vmem>> -> memref<1x128xf32, #tpu.memory_space<vmem>>
    %c14_i32_122 = arith.constant 14 : i32
    %c0_i32_123 = arith.constant 0 : i32
    %170 = tpu.memref_slice %arg3[%c14_i32_122, %c0_i32_123] : memref<16x128xf32, #tpu.memory_space<vmem>> -> memref<1x128xf32, #tpu.memory_space<vmem>>
    %171 = tpu.memref_slice %arg4[%c14_i32_120] : memref<16x!tpu.dma_semaphore, #tpu.memory_space<semaphore_mem>> -> memref<1x!tpu.dma_semaphore, #tpu.memory_space<semaphore_mem>>
    %172 = tpu.memref_squeeze %171 : memref<1x!tpu.dma_semaphore, #tpu.memory_space<semaphore_mem>> -> memref<!tpu.dma_semaphore, #tpu.memory_space<semaphore_mem>>
    tpu.wait_dma2 semaphore(%172 : memref<!tpu.dma_semaphore, #tpu.memory_space<semaphore_mem>>) src(%169 : memref<1x128xf32, #tpu.memory_space<vmem>>) dst(%170 : memref<1x128xf32, #tpu.memory_space<vmem>>)
    %c15_i32_124 = arith.constant 15 : i32
    %c0_i32_125 = arith.constant 0 : i32
    %173 = tpu.memref_slice %arg2[%48, %c0_i32_125] : memref<128x128xf32, #tpu.memory_space<vmem>> -> memref<1x128xf32, #tpu.memory_space<vmem>>
    %c15_i32_126 = arith.constant 15 : i32
    %c0_i32_127 = arith.constant 0 : i32
    %174 = tpu.memref_slice %arg3[%c15_i32_126, %c0_i32_127] : memref<16x128xf32, #tpu.memory_space<vmem>> -> memref<1x128xf32, #tpu.memory_space<vmem>>
    %175 = tpu.memref_slice %arg4[%c15_i32_124] : memref<16x!tpu.dma_semaphore, #tpu.memory_space<semaphore_mem>> -> memref<1x!tpu.dma_semaphore, #tpu.memory_space<semaphore_mem>>
    %176 = tpu.memref_squeeze %175 : memref<1x!tpu.dma_semaphore, #tpu.memory_space<semaphore_mem>> -> memref<!tpu.dma_semaphore, #tpu.memory_space<semaphore_mem>>
    tpu.wait_dma2 semaphore(%176 : memref<!tpu.dma_semaphore, #tpu.memory_space<semaphore_mem>>) src(%173 : memref<1x128xf32, #tpu.memory_space<vmem>>) dst(%174 : memref<1x128xf32, #tpu.memory_space<vmem>>)
    return
  }
  func.func @transform_0(%arg0: i32, %arg1: memref<16xi32, #tpu.memory_space<smem>>) -> (i32, i32) {
    %c0_i32 = arith.constant 0 : i32
    %c0_i32_0 = arith.constant 0 : i32
    %c0_i32_1 = arith.constant 0 : i32
    return %c0_i32, %c0_i32_0 : i32, i32
  }
  func.func @transform_1(%arg0: i32, %arg1: memref<16xi32, #tpu.memory_space<smem>>) -> (i32, i32) {
    %c0_i32 = arith.constant 0 : i32
    %c0_i32_0 = arith.constant 0 : i32
    return %arg0, %c0_i32 : i32, i32
  }
}

</mosaic_0001>

<bundles_post_ra>
// kernel: tpu_custom_call.1
= control target key start
LH: loop header
LB: loop body
LE: loop exit
PB: predicated region body
PF: predicated region fallthrough
CT: control target
= control target key end

     0   :  { %s1388_s0 = inlined_call_operand.hbm [shape: s32[16], index: 0, kind: input, shape index: {}]   ;;  %s1389_s1 = inlined_call_operand.hbm [shape: f32[128,128], index: 1, kind: input, shape index: {}]   ;;  %s1390_s2 = inlined_call_operand.hbm [shape: f32[16,128], index: 2, kind: output, shape index: {}]  }
   0x1   :  { %s1198_s11 = scalar_lea.hbm %s1388_s0, 16 }
   0x2   :  { %p1199_p0 = scmp.ne.s32.totalorder %s1388_s0, %s1198_s11  ;;  %p1202_p1 = scmp.lt.u32.totalorder %s1198_s11, %s1388_s0 }
   0x4   :  { %p1204_p2 = pnand %p1202_p1, %p1199_p0 }
   0x6   :  { %1207 = shalt.err (!%p1204_p2)  }
   0x7   :  { %s1290_s16 = smov [#allocation4]  }
   0x8   :  { %8 = dma.hbm_to_smem %s1388_s0, 16, %s1290_s16, [#allocation3] }
   0x9   :  { %1252 = dma.done.wait [#allocation3], 16 }
   0xa   :  { %1253 = vsyncadd [#allocation3], 4294967280 }
   0xb   :  { %10 = sfence }
   0xc   :  { %11 = vsyncpa [#allocation6], 0 }
   0xd   :  { %12 = vsyncpa [#allocation7], 0  ;;  %s1291_s19 = smov [#allocation5]   ;;  %s1208_s23 = scalar_lea.hbm %s1389_s1, 2048 }
   0xe   :  { %s18_s20 = sshll.u32 %s1291_s19, 4  ;;  %p1209_p3 = scmp.ne.s32.totalorder %s1389_s1, %s1208_s23  ;;  %s19_s20 = int_to_ptr.vmem [resolvable:$true] %s18_s20 }
   0xf   :  { %p1212_p4 = scmp.lt.u32.totalorder %s1208_s23, %s1389_s1 }
  0x11   :  { %p1214_p5 = pnand %p1212_p4, %p1209_p3 }
  0x13   :  { %1217 = shalt.err (!%p1214_p5)
}
  0x14   :  { %s1218_s0 = scalar_lea.vmem %s19_s20, 2048  ;;  %p1223_p7 = scmp.lt.s32.totalorder %s19_s20, %s19_s20 }
  0x15   :  { %p1219_p6 = scmp.ne.s32.totalorder %s19_s20, %s1218_s0  ;;  %p1224_p8 = scmp.lt.s32.totalorder %s1218_s0, %s1218_s0 }
  0x17   :  { %p1225_p9 = por %p1224_p8, %p1223_p7 }
  0x19   :  { %p1226_p10 = pnand %p1225_p9, %p1219_p6 }
  0x1b   :  { %1229 = shalt.err (!%p1226_p10)
}
  0x1c   :  { %s1292_s28 = smov 128   ;;  %s1293_s29 = smov 8  }
  0x1d   :  { %24 = dma.hbm_to_vmem [thread:$0]  %s1389_s1, 2048, %s19_s20, [#allocation6], %s1292_s28, %s1292_s28, %s1293_s29  }
  0x1e   :  { %1254 = dma.done.wait [#allocation6], 2048  }
  0x1f   :  { %1255 = vsyncadd [#allocation6], 4294965248  ;;  %s1162_s4 = sld [smem:[#allocation4 + $0x1]]  ;;  %s1163_s5 = sld [smem:[#allocation4 + $0x2]] }
  0x20   :  { %s1164_s6 = sld [smem:[#allocation4 + $0x3]]  ;;  %s1337_s7 = sld [smem:[#allocation4 + $0x4]] }
  0x21   :  { %s1339_s8 = sld [smem:[#allocation4 + $0x5]]  ;;  %s1341_s9 = sld [smem:[#allocation4 + $0x6]] }
  0x22   :  { %s1343_s10 = sld [smem:[#allocation4 + $0x7]]  ;;  %s1345_s11 = sld [smem:[#allocation4 + $0x8]] }
  0x23   :  { %s1347_s12 = sld [smem:[#allocation4 + $0x9]]  ;;  %s1349_s13 = sld [smem:[#allocation4 + $0xa]] }
  0x24   :  { %s1351_s1 = sld [smem:[#allocation4 + $0xb]]  ;;  %s1353_s14 = sld [smem:[#allocation4 + $0xc]] }
  0x25   :  { %s1355_s15 = sld [smem:[#allocation4 + $0xd]]  ;;  %s1357_s16 = sld [smem:[#allocation4 + $0xe]] }
  0x26   :  { %s1359_s17 = sld [smem:[#allocation4 + $0xf]]  ;;  %s29_s18 = sld [smem:[#allocation4]] }
  0x2c   :  { %s60_s19 = scalar_lea.vmem [#allocation5], %s29_s18 }
  0x2d   :  { %v78_v0 = vld [vmem:[%s60_s19] sm:$0x1] }
  0x2e   :  { %79 = vst [vmem:[#allocation8] sm:$0x1] %v78_v0 }
  0x2f   :  { %104 = vsyncadd [#allocation2], 16  ;;  %s105_s20 = scalar_lea.vmem [#allocation5], %s1162_s4 }
  0x30   :  { %v125_v1 = vld [vmem:[%s105_s20] sm:$0x1] }
  0x31   :  { %126 = vst [vmem:[#allocation8 + $0x1] sm:$0x1] %v125_v1 }
  0x32   :  { %151 = vsyncadd [#allocation2 + $0x1], 16  ;;  %s152_s21 = scalar_lea.vmem [#allocation5], %s1163_s5 }
  0x33   :  { %v172_v2 = vld [vmem:[%s152_s21] sm:$0x1] }
  0x34   :  { %173 = vst [vmem:[#allocation8 + $0x2] sm:$0x1] %v172_v2 }
  0x35   :  { %198 = vsyncadd [#allocation2 + $0x2], 16  ;;  %s199_s22 = scalar_lea.vmem [#allocation5], %s1164_s6 }
  0x36   :  { %v219_v3 = vld [vmem:[%s199_s22] sm:$0x1] }
  0x37   :  { %220 = vst [vmem:[#allocation8 + $0x3] sm:$0x1] %v219_v3 }
  0x38   :  { %245 = vsyncadd [#allocation2 + $0x3], 16  ;;  %s246_s23 = scalar_lea.vmem [#allocation5], %s1337_s7 }
  0x39   :  { %v266_v4 = vld [vmem:[%s246_s23] sm:$0x1] }
  0x3a   :  { %267 = vst [vmem:[#allocation8 + $0x4] sm:$0x1] %v266_v4 }
  0x3b   :  { %292 = vsyncadd [#allocation2 + $0x4], 16  ;;  %s293_s24 = scalar_lea.vmem [#allocation5], %s1339_s8 }
  0x3c   :  { %v313_v5 = vld [vmem:[%s293_s24] sm:$0x1] }
  0x3d   :  { %314 = vst [vmem:[#allocation8 + $0x5] sm:$0x1] %v313_v5 }
  0x3e   :  { %339 = vsyncadd [#allocation2 + $0x5], 16  ;;  %s340_s25 = scalar_lea.vmem [#allocation5], %s1341_s9 }
  0x3f   :  { %v360_v6 = vld [vmem:[%s340_s25] sm:$0x1] }
  0x40   :  { %361 = vst [vmem:[#allocation8 + $0x6] sm:$0x1] %v360_v6 }
  0x41   :  { %386 = vsyncadd [#allocation2 + $0x6], 16  ;;  %s387_s26 = scalar_lea.vmem [#allocation5], %s1343_s10 }
  0x42   :  { %v407_v7 = vld [vmem:[%s387_s26] sm:$0x1] }
  0x43   :  { %408 = vst [vmem:[#allocation8 + $0x7] sm:$0x1] %v407_v7 }
  0x44   :  { %433 = vsyncadd [#allocation2 + $0x7], 16  ;;  %s434_s27 = scalar_lea.vmem [#allocation5], %s1345_s11 }
  0x45   :  { %v454_v8 = vld [vmem:[%s434_s27] sm:$0x1] }
  0x46   :  { %455 = vst [vmem:[#allocation8 + $0x8] sm:$0x1] %v454_v8 }
  0x47   :  { %480 = vsyncadd [#allocation2 + $0x8], 16  ;;  %s481_s0 = scalar_lea.vmem [#allocation5], %s1347_s12 }
  0x48   :  { %v501_v9 = vld [vmem:[%s481_s0] sm:$0x1] }
  0x49   :  { %502 = vst [vmem:[#allocation8 + $0x9] sm:$0x1] %v501_v9 }
  0x4a   :  { %527 = vsyncadd [#allocation2 + $0x9], 16  ;;  %s528_s30 = scalar_lea.vmem [#allocation5], %s1349_s13 }
  0x4b   :  { %v548_v10 = vld [vmem:[%s528_s30] sm:$0x1] }
  0x4c   :  { %549 = vst [vmem:[#allocation8 + $0xa] sm:$0x1] %v548_v10 }
  0x4d   :  { %574 = vsyncadd [#allocation2 + $0xa], 16  ;;  %s575_s3 = scalar_lea.vmem [#allocation5], %s1351_s1 }
  0x4e   :  { %v595_v11 = vld [vmem:[%s575_s3] sm:$0x1] }
  0x4f   :  { %596 = vst [vmem:[#allocation8 + $0xb] sm:$0x1] %v595_v11 }
  0x50   :  { %621 = vsyncadd [#allocation2 + $0xb], 16  ;;  %s622_s4 = scalar_lea.vmem [#allocation5], %s1353_s14 }
  0x51   :  { %v642_v12 = vld [vmem:[%s622_s4] sm:$0x1] }
  0x52   :  { %643 = vst [vmem:[#allocation8 + $0xc] sm:$0x1] %v642_v12 }
  0x53   :  { %668 = vsyncadd [#allocation2 + $0xc], 16  ;;  %s669_s5 = scalar_lea.vmem [#allocation5], %s1355_s15 }
  0x54   :  { %v689_v13 = vld [vmem:[%s669_s5] sm:$0x1] }
  0x55   :  { %690 = vst [vmem:[#allocation8 + $0xd] sm:$0x1] %v689_v13 }
  0x56   :  { %715 = vsyncadd [#allocation2 + $0xd], 16  ;;  %s716_s6 = scalar_lea.vmem [#allocation5], %s1357_s16 }
  0x57   :  { %v736_v14 = vld [vmem:[%s716_s6] sm:$0x1] }
  0x58   :  { %737 = vst [vmem:[#allocation8 + $0xe] sm:$0x1] %v736_v14 }
  0x59   :  { %762 = vsyncadd [#allocation2 + $0xe], 16  ;;  %s763_s7 = scalar_lea.vmem [#allocation5], %s1359_s17 }
  0x5a   :  { %v783_v15 = vld [vmem:[%s763_s7] sm:$0x1] }
  0x5b   :  { %784 = vst [vmem:[#allocation8 + $0xf] sm:$0x1] %v783_v15 }
  0x5c   :  { %809 = vsyncadd [#allocation2 + $0xf], 16 }
  0x5d   :  { %1256 = dma.done.wait [#allocation2], 16 }
  0x5e   :  { %1257 = vsyncadd [#allocation2], 4294967280 }
  0x5f   :  { %1258 = dma.done.wait [#allocation2 + $0x1], 16 }
  0x60   :  { %1259 = vsyncadd [#allocation2 + $0x1], 4294967280 }
  0x61   :  { %1260 = dma.done.wait [#allocation2 + $0x2], 16 }
  0x62   :  { %1261 = vsyncadd [#allocation2 + $0x2], 4294967280 }
  0x63   :  { %1262 = dma.done.wait [#allocation2 + $0x3], 16 }
  0x64   :  { %1263 = vsyncadd [#allocation2 + $0x3], 4294967280 }
  0x65   :  { %1264 = dma.done.wait [#allocation2 + $0x4], 16 }
  0x66   :  { %1265 = vsyncadd [#allocation2 + $0x4], 4294967280 }
  0x67   :  { %1266 = dma.done.wait [#allocation2 + $0x5], 16 }
  0x68   :  { %1267 = vsyncadd [#allocation2 + $0x5], 4294967280 }
  0x69   :  { %1268 = dma.done.wait [#allocation2 + $0x6], 16 }
  0x6a   :  { %1269 = vsyncadd [#allocation2 + $0x6], 4294967280 }
  0x6b   :  { %1270 = dma.done.wait [#allocation2 + $0x7], 16 }
  0x6c   :  { %1271 = vsyncadd [#allocation2 + $0x7], 4294967280 }
  0x6d   :  { %1272 = dma.done.wait [#allocation2 + $0x8], 16 }
  0x6e   :  { %1273 = vsyncadd [#allocation2 + $0x8], 4294967280 }
  0x6f   :  { %1274 = dma.done.wait [#allocation2 + $0x9], 16 }
  0x70   :  { %1275 = vsyncadd [#allocation2 + $0x9], 4294967280 }
  0x71   :  { %1276 = dma.done.wait [#allocation2 + $0xa], 16 }
  0x72   :  { %1277 = vsyncadd [#allocation2 + $0xa], 4294967280 }
  0x73   :  { %1278 = dma.done.wait [#allocation2 + $0xb], 16 }
  0x74   :  { %1279 = vsyncadd [#allocation2 + $0xb], 4294967280 }
  0x75   :  { %1280 = dma.done.wait [#allocation2 + $0xc], 16 }
  0x76   :  { %1281 = vsyncadd [#allocation2 + $0xc], 4294967280 }
  0x77   :  { %1282 = dma.done.wait [#allocation2 + $0xd], 16 }
  0x78   :  { %1283 = vsyncadd [#allocation2 + $0xd], 4294967280 }
  0x79   :  { %1284 = dma.done.wait [#allocation2 + $0xe], 16 }
  0x7a   :  { %1285 = vsyncadd [#allocation2 + $0xe], 4294967280 }
  0x7b   :  { %1286 = dma.done.wait [#allocation2 + $0xf], 16 }
  0x7c   :  { %1287 = vsyncadd [#allocation2 + $0xf], 4294967280  ;;  %s1294_s8 = smov [#allocation8]  }
  0x7d   :  { %s848_s9 = sshll.u32 %s1294_s8, 4  ;;  %s849_s9 = int_to_ptr.vmem [resolvable:$true] %s848_s9 }
  0x7e   :  { %s1230_s10 = scalar_lea.vmem %s849_s9, 256  ;;  %p1235_p12 = scmp.lt.s32.totalorder %s849_s9, %s849_s9 }
  0x7f   :  { %p1231_p11 = scmp.ne.s32.totalorder %s849_s9, %s1230_s10  ;;  %p1236_p13 = scmp.lt.s32.totalorder %s1230_s10, %s1230_s10 }
  0x81   :  { %p1237_p0 = por %p1236_p13, %p1235_p12 }
  0x83   :  { %p1238_p1 = pnand %p1237_p0, %p1231_p11 }
  0x85   :  { %1241 = shalt.err (!%p1238_p1)
}
  0x86   :  { %s1242_s13 = scalar_lea.hbm %s1390_s2, 256 }
  0x87   :  { %p1243_p2 = scmp.ne.s32.totalorder %s1390_s2, %s1242_s13  ;;  %p1246_p3 = scmp.lt.u32.totalorder %s1242_s13, %s1390_s2 }
  0x89   :  { %p1248_p4 = pnand %p1246_p3, %p1243_p2 }
  0x8b   :  { %1251 = shalt.err (!%p1248_p4)
}
  0x8c   :  { %854 = dma.vmem_to_hbm [thread:$0]  %s849_s9, 256, %s1390_s2, [#allocation7], %s1292_s28, %s1292_s28, %s1293_s29  }
  0x8d   :  { %1288 = dma.done.wait [#allocation7], 256  }
  0x8e   :  { %1289 = vsyncadd [#allocation7], 4294967040 }
  0x8f   :  { %858 = vsyncpa [#allocation6], 1 }
  0x90   :  { %859 = vsyncpa [#allocation7], 1 }
  0x91   :  { %860 = vsyncmov [#allocation2] }
  0x94   :  { %s861_s19 = vpop.sfrf %860 }
  0x95   :  { %p1177_p5 = scmp.ne.s32.totalorder %s861_s19, 0 }
  0x97   :  { %865 = shalt.err (%p1177_p5)  }
  0x98   :  { %867 = vsyncmov [#allocation2 + $0x1] }
  0x9b   :  { %s868_s20 = vpop.sfrf %867 }
  0x9c   :  { %p1178_p6 = scmp.ne.s32.totalorder %s868_s20, 0 }
  0x9e   :  { %872 = shalt.err (%p1178_p6)  }
  0x9f   :  { %874 = vsyncmov [#allocation2 + $0x2] }
  0xa2   :  { %s875_s21 = vpop.sfrf %874 }
  0xa3   :  { %p1179_p7 = scmp.ne.s32.totalorder %s875_s21, 0 }
  0xa5   :  { %879 = shalt.err (%p1179_p7)  }
  0xa6   :  { %881 = vsyncmov [#allocation2 + $0x3] }
  0xa9   :  { %s882_s22 = vpop.sfrf %881 }
  0xaa   :  { %p1180_p8 = scmp.ne.s32.totalorder %s882_s22, 0 }
  0xac   :  { %886 = shalt.err (%p1180_p8)  }
  0xad   :  { %888 = vsyncmov [#allocation2 + $0x4] }
  0xb0   :  { %s889_s2 = vpop.sfrf %888 }
  0xb1   :  { %p1181_p9 = scmp.ne.s32.totalorder %s889_s2, 0 }
  0xb3   :  { %893 = shalt.err (%p1181_p9)  }
  0xb4   :  { %895 = vsyncmov [#allocation2 + $0x5] }
  0xb7   :  { %s896_s28 = vpop.sfrf %895 }
  0xb8   :  { %p1182_p10 = scmp.ne.s32.totalorder %s896_s28, 0 }
  0xba   :  { %900 = shalt.err (%p1182_p10)  }
  0xbb   :  { %902 = vsyncmov [#allocation2 + $0x6] }
  0xbe   :  { %s903_s29 = vpop.sfrf %902 }
  0xbf   :  { %p1183_p11 = scmp.ne.s32.totalorder %s903_s29, 0 }
  0xc1   :  { %907 = shalt.err (%p1183_p11)  }
  0xc2   :  { %909 = vsyncmov [#allocation2 + $0x7] }
  0xc5   :  { %s910_s23 = vpop.sfrf %909 }
  0xc6   :  { %p1184_p12 = scmp.ne.s32.totalorder %s910_s23, 0 }
  0xc8   :  { %914 = shalt.err (%p1184_p12)  }
  0xc9   :  { %916 = vsyncmov [#allocation2 + $0x8] }
  0xcc   :  { %s917_s24 = vpop.sfrf %916 }
  0xcd   :  { %p1185_p13 = scmp.ne.s32.totalorder %s917_s24, 0 }
  0xcf   :  { %921 = shalt.err (%p1185_p13)  }
  0xd0   :  { %923 = vsyncmov [#allocation2 + $0x9] }
  0xd3   :  { %s924_s25 = vpop.sfrf %923 }
  0xd4   :  { %p1186_p0 = scmp.ne.s32.totalorder %s924_s25, 0 }
  0xd6   :  { %928 = shalt.err (%p1186_p0)  }
  0xd7   :  { %930 = vsyncmov [#allocation2 + $0xa] }
  0xda   :  { %s931_s26 = vpop.sfrf %930 }
  0xdb   :  { %p1187_p1 = scmp.ne.s32.totalorder %s931_s26, 0 }
  0xdd   :  { %935 = shalt.err (%p1187_p1)  }
  0xde   :  { %937 = vsyncmov [#allocation2 + $0xb] }
  0xe1   :  { %s938_s27 = vpop.sfrf %937 }
  0xe2   :  { %p1188_p2 = scmp.ne.s32.totalorder %s938_s27, 0 }
  0xe4   :  { %942 = shalt.err (%p1188_p2)  }
  0xe5   :  { %944 = vsyncmov [#allocation2 + $0xc] }
  0xe8   :  { %s945_s0 = vpop.sfrf %944 }
  0xe9   :  { %p1189_p3 = scmp.ne.s32.totalorder %s945_s0, 0 }
  0xeb   :  { %949 = shalt.err (%p1189_p3)  }
  0xec   :  { %951 = vsyncmov [#allocation2 + $0xd] }
  0xef   :  { %s952_s30 = vpop.sfrf %951 }
  0xf0   :  { %p1190_p4 = scmp.ne.s32.totalorder %s952_s30, 0 }
  0xf2   :  { %956 = shalt.err (%p1190_p4)  }
  0xf3   :  { %958 = vsyncmov [#allocation2 + $0xe] }
  0xf6   :  { %s959_s3 = vpop.sfrf %958 }
  0xf7   :  { %p1191_p5 = scmp.ne.s32.totalorder %s959_s3, 0 }
  0xf9   :  { %963 = shalt.err (%p1191_p5)  }
  0xfa   :  { %965 = vsyncmov [#allocation2 + $0xf] }
  0xfd   :  { %s966_s4 = vpop.sfrf %965 }
  0xfe   :  { %p1192_p6 = scmp.ne.s32.totalorder %s966_s4, 0 }
 0x100   :  { %970 = shalt.err (%p1192_p6)  }

</bundles_post_ra>
